<compile_context>
chip_gen: v7x
topology: tpu7x:2x2x1
jax: 0.10.0
libtpu: 0.0.40
codegen_flags: <defaults>
</compile_context>

<pallas_src>
import functools

import jax
import jax.numpy as jnp
from jax.experimental import pallas as pl
from jax.experimental.pallas import tpu as pltpu


def linear_batchnorm_kernel(x_ref, gamma_ref, beta_ref, o_ref, *, eps, n_rows):
    """One (N, TILE_D) channel tile: per-channel batch-norm over the N rows."""
    x = x_ref[...].astype(jnp.float32)                    # [N, TILE_D], lane-dense in D
    inv_n = 1.0 / n_rows

    # Single pass over x for the statistics (no [N, TILE_D] `centered` temp).
    s1 = jnp.sum(x, axis=0, keepdims=True)                # [1, TILE_D]
    s2 = jnp.sum(x * x, axis=0, keepdims=True)            # [1, TILE_D]
    mean = s1 * inv_n
    var = jnp.maximum(s2 * inv_n - mean * mean, 0.0)      # biased variance, clamp cancellation
    inv_std = jax.lax.rsqrt(var + eps)                    # EUP transcendental

    gamma = gamma_ref[...].astype(jnp.float32)            # [1, TILE_D]
    beta = beta_ref[...].astype(jnp.float32)              # [1, TILE_D]
    scale = gamma * inv_std                               # fold gamma into scale
    shift = beta - mean * scale                           # fold mean/beta into shift

    # Output pass: one fused multiply-add per element, one store stream.
    o_ref[...] = (x * scale + shift).astype(o_ref.dtype)


def _choose_tile_d(n_rows, d, itemsize, vmem_budget_bytes):
    """Largest lane-dense (multiple-of-128) channel tile fitting the VMEM budget."""
    # Per grid step: double-buffered x input + double-buffered output + f32 temps
    # ~= 6 * N * TILE_D * itemsize.  Keep it conservative so it fits every chip's
    # default scoped VMEM (16 MiB v5e / 32 MiB v6e,v7x) with headroom.
    cap = max(128, vmem_budget_bytes // (6 * n_rows * itemsize))
    tile = (cap // 128) * 128
    tile = max(128, tile)
    if tile >= d:
        return d                                          # full-D block (no lane padding issues)
    return tile


def linear_batchnorm(x, gamma, beta, *, eps=1e-5, tile_d=None,
                     vmem_budget_bytes=16 * 1024 * 1024):
    """x: [N, D] features; gamma/beta: [D] affine params (BatchNorm2d affine=True)."""
    N, D = x.shape
    itemsize = 4  # stats are accumulated in f32
    if tile_d is None:
        tile_d = _choose_tile_d(N, D, itemsize, vmem_budget_bytes)
    tile_d = min(tile_d, D)
    grid_d = pl.cdiv(D, tile_d)

    # gamma/beta as (1, D) so they broadcast over the sublane (row) axis.
    gamma2 = gamma.reshape(1, D)
    beta2 = beta.reshape(1, D)

    # Explicit scoped-VMEM request sized to the actual footprint (clamped so it
    # is safe on v7x's 64 MiB physical VMEM).
    step_bytes = N * tile_d * itemsize
    vmem_limit = int(min(max(8 * step_bytes + (1 << 20), 16 * 1024 * 1024),
                         48 * 1024 * 1024))

    out_itemsize = jnp.dtype(x.dtype).itemsize
    cost = pl.CostEstimate(
        flops=6 * N * D,                       # sums, sumsq, output FMA (approx.)
        transcendentals=D,                     # rsqrt per channel
        bytes_accessed=N * D * (x.dtype.itemsize + out_itemsize) + 2 * D * itemsize,
    )

    return pl.pallas_call(
        functools.partial(linear_batchnorm_kernel, eps=eps, n_rows=N),
        out_shape=jax.ShapeDtypeStruct((N, D), x.dtype),
        grid=(grid_d,),
        in_specs=[
            pl.BlockSpec((N, tile_d), lambda j: (0, j)),   # x: full N, channel tile
            pl.BlockSpec((1, tile_d), lambda j: (0, j)),   # gamma
            pl.BlockSpec((1, tile_d), lambda j: (0, j)),   # beta
        ],
        out_specs=pl.BlockSpec((N, tile_d), lambda j: (0, j)),
        compiler_params=pltpu.CompilerParams(
            dimension_semantics=("parallel",),             # D tiles are independent
            vmem_limit_bytes=vmem_limit,
        ),
        cost_estimate=cost,
    )(x, gamma2, beta2)


if __name__ == "__main__":
    # Small shapes consistent with the module: x is [N, dim] feature vectors.
    N, DIM = 8, 512
    EPS = 1e-5

    key = jax.random.PRNGKey(0)
    k_x, k_g, k_b = jax.random.split(key, 3)

    x = jax.random.normal(k_x, (N, DIM), dtype=jnp.float32) * 2.0 + 0.5
    # Affine params (fresh-module init would be ones/zeros; random exercises the path).
    gamma = jax.random.uniform(k_g, (DIM,), minval=0.5, maxval=1.5, dtype=jnp.float32)
    beta = jax.random.normal(k_b, (DIM,), dtype=jnp.float32) * 0.1

    # Pure-JAX reference: BatchNorm2d training-mode forward on [N, C, 1, 1].
    mean = x.mean(axis=0, keepdims=True)
    var = ((x - mean) ** 2).mean(axis=0, keepdims=True)        # biased variance
    ref = gamma * (x - mean) / jnp.sqrt(var + EPS) + beta

    # 1) Default tile selection (full-D block for this small shape).
    out_default = jax.block_until_ready(linear_batchnorm(x, gamma, beta, eps=EPS))
    # 2) Explicit 128-wide channel tiles -> grid of 4, exercises the pipelined path.
    out_tiled = jax.block_until_ready(
        linear_batchnorm(x, gamma, beta, eps=EPS, tile_d=128))

    assert out_default.shape == (N, DIM)
    assert out_tiled.shape == (N, DIM)
    assert jnp.allclose(out_default, ref, atol=1e-4, rtol=1e-4), "default-tile mismatch"
    assert jnp.allclose(out_tiled, ref, atol=1e-4, rtol=1e-4), "tiled mismatch"

    print("KERNEL_OK")
</pallas_src>

<mosaic_0001>
module attributes {stable_mosaic.version = 11 : i64} {
  func.func @linear_batchnorm_kernel(%arg0: i32, %arg1: memref<8x512xf32, #tpu.memory_space<vmem>>, %arg2: memref<1x512xf32, #tpu.memory_space<vmem>>, %arg3: memref<1x512xf32, #tpu.memory_space<vmem>>, %arg4: memref<8x512xf32, #tpu.memory_space<vmem>>) attributes {dimension_semantics = [#tpu.dimension_semantics<parallel>], iteration_bounds = array<i64: 1>, scalar_prefetch = 0 : i64, scratch_operands = 0 : i64, tpu.core_type = #tpu.core_type<tc>, window_params = [{transform_indices = @transform_0, window_bounds = array<i64: 8, 512>}, {transform_indices = @transform_1, window_bounds = array<i64: 1, 512>}, {transform_indices = @transform_2, window_bounds = array<i64: 1, 512>}, {transform_indices = @transform_3, window_bounds = array<i64: 8, 512>}]} {
    %c0 = arith.constant 0 : index
    %c0_0 = arith.constant 0 : index
    %0 = vector.load %arg1[%c0, %c0_0] : memref<8x512xf32, #tpu.memory_space<vmem>>, vector<8x512xf32>
    %cst = arith.constant dense<0.000000e+00> : vector<512xf32>
    %1 = vector.multi_reduction <add>, %0, %cst [0] : vector<8x512xf32> to vector<512xf32>
    %2 = vector.shape_cast %1 : vector<512xf32> to vector<1x512xf32>
    %3 = arith.mulf %0, %0 : vector<8x512xf32>
    %cst_1 = arith.constant dense<0.000000e+00> : vector<512xf32>
    %4 = vector.multi_reduction <add>, %3, %cst_1 [0] : vector<8x512xf32> to vector<512xf32>
    %5 = vector.shape_cast %4 : vector<512xf32> to vector<1x512xf32>
    %cst_2 = arith.constant 1.250000e-01 : f32
    %6 = vector.broadcast %cst_2 : f32 to vector<1x512xf32>
    %7 = arith.mulf %2, %6 : vector<1x512xf32>
    %cst_3 = arith.constant 1.250000e-01 : f32
    %8 = vector.broadcast %cst_3 : f32 to vector<1x512xf32>
    %9 = arith.mulf %5, %8 : vector<1x512xf32>
    %10 = arith.mulf %7, %7 : vector<1x512xf32>
    %11 = arith.subf %9, %10 : vector<1x512xf32>
    %cst_4 = arith.constant 0.000000e+00 : f32
    %12 = vector.broadcast %cst_4 : f32 to vector<1x512xf32>
    %13 = arith.maximumf %11, %12 : vector<1x512xf32>
    %cst_5 = arith.constant 9.99999974E-6 : f32
    %14 = vector.broadcast %cst_5 : f32 to vector<1x512xf32>
    %15 = arith.addf %13, %14 : vector<1x512xf32>
    %16 = math.rsqrt %15 : vector<1x512xf32>
    %c0_6 = arith.constant 0 : index
    %c0_7 = arith.constant 0 : index
    %17 = vector.load %arg2[%c0_6, %c0_7] : memref<1x512xf32, #tpu.memory_space<vmem>>, vector<1x512xf32>
    %c0_8 = arith.constant 0 : index
    %c0_9 = arith.constant 0 : index
    %18 = vector.load %arg3[%c0_8, %c0_9] : memref<1x512xf32, #tpu.memory_space<vmem>>, vector<1x512xf32>
    %19 = arith.mulf %17, %16 : vector<1x512xf32>
    %20 = arith.mulf %7, %19 : vector<1x512xf32>
    %21 = arith.subf %18, %20 : vector<1x512xf32>
    %22 = vector.broadcast %19 : vector<1x512xf32> to vector<8x512xf32>
    %23 = arith.mulf %0, %22 : vector<8x512xf32>
    %24 = vector.broadcast %21 : vector<1x512xf32> to vector<8x512xf32>
    %25 = arith.addf %23, %24 : vector<8x512xf32>
    %c0_10 = arith.constant 0 : index
    %c0_11 = arith.constant 0 : index
    %26 = vector.load %arg4[%c0_10, %c0_11] : memref<8x512xf32, #tpu.memory_space<vmem>>, vector<8x512xf32>
    tpu.vector_store %arg4[%c0_10, %c0_11], %25 {strides = array<i32>} : memref<8x512xf32, #tpu.memory_space<vmem>>, vector<8x512xf32>,
    return
  }
  func.func @transform_0(%arg0: i32) -> (i32, i32) {
    %c0_i32 = arith.constant 0 : i32
    %c0_i32_0 = arith.constant 0 : i32
    return %c0_i32, %arg0 : i32, i32
  }
  func.func @transform_1(%arg0: i32) -> (i32, i32) {
    %c0_i32 = arith.constant 0 : i32
    %c0_i32_0 = arith.constant 0 : i32
    return %c0_i32, %arg0 : i32, i32
  }
  func.func @transform_2(%arg0: i32) -> (i32, i32) {
    %c0_i32 = arith.constant 0 : i32
    %c0_i32_0 = arith.constant 0 : i32
    return %c0_i32, %arg0 : i32, i32
  }
  func.func @transform_3(%arg0: i32) -> (i32, i32) {
    %c0_i32 = arith.constant 0 : i32
    %c0_i32_0 = arith.constant 0 : i32
    return %c0_i32, %arg0 : i32, i32
  }
}

</mosaic_0001>

<bundles_post_ra>
// kernel: tpu_custom_call.1
= control target key start
LH: loop header
LB: loop body
LE: loop exit
PB: predicated region body
PF: predicated region fallthrough
CT: control target
= control target key end

     0   :  { %8 = vsyncpa [#allocation3], 0  ;;  %s434_s0 = inlined_call_operand.hbm [shape: f32[8,512], index: 0, kind: input, shape index: {}]   ;;  %s435_s1 = inlined_call_operand.hbm [shape: f32[1,512], index: 1, kind: input, shape index: {}]   ;;  %s436_s2 = inlined_call_operand.vmem [shape: f32[1,512], index: 2, kind: input, shape index: {}]   ;;  %s437_s3 = inlined_call_operand.hbm [shape: f32[8,512], index: 3, kind: output, shape index: {}]  }
   0x1   :  { %9 = vsyncpa [#allocation6], 0 }
   0x2   :  { %10 = vsyncpa [#allocation4], 0  ;;  %s343_s12 = smov [#allocation2]   ;;  %s344_s14 = smov [#allocation5]  }
   0x3   :  { %s17_s13 = sshll.u32 %s343_s12, 4  ;;  %s27_s15 = sshll.u32 %s344_s14, 4  ;;  %s18_s13 = int_to_ptr.vmem [resolvable:$true] %s17_s13  ;;  %s28_s15 = int_to_ptr.vmem [resolvable:$true] %s27_s15 }
   0x4   :  { %s271_s18 = scalar_lea.hbm %s434_s0, 512 }
   0x5   :  { %p272_p0 = scmp.ne.s32.totalorder %s434_s0, %s271_s18  ;;  %p275_p1 = scmp.lt.u32.totalorder %s271_s18, %s434_s0 }
   0x7   :  { %p277_p2 = pnand %p275_p1, %p272_p0 }
   0x9   :  { %280 = shalt.err (!%p277_p2)
}
   0xa   :  { %s281_s23 = scalar_lea.vmem %s18_s13, 512  ;;  %p286_p4 = scmp.lt.s32.totalorder %s18_s13, %s18_s13 }
   0xb   :  { %p282_p3 = scmp.ne.s32.totalorder %s18_s13, %s281_s23  ;;  %p287_p5 = scmp.lt.s32.totalorder %s281_s23, %s281_s23 }
   0xd   :  { %p288_p6 = por %p287_p5, %p286_p4 }
   0xf   :  { %p289_p7 = pnand %p288_p6, %p282_p3 }
  0x11   :  { %292 = shalt.err (!%p289_p7)
}
  0x12   :  { %20 = dma.hbm_to_vmem [thread:$0]  %s434_s0, 512, %s18_s13, [#allocation3]  }
  0x13   :  { %s293_s28 = scalar_lea.hbm %s435_s1, 64 }
  0x14   :  { %p294_p8 = scmp.ne.s32.totalorder %s435_s1, %s293_s28  ;;  %p297_p9 = scmp.lt.u32.totalorder %s293_s28, %s435_s1 }
  0x16   :  { %p299_p10 = pnand %p297_p9, %p294_p8 }
  0x18   :  { %302 = shalt.err (!%p299_p10)
}
  0x19   :  { %s303_s6 = scalar_lea.vmem %s28_s15, 64  ;;  %p308_p12 = scmp.lt.s32.totalorder %s28_s15, %s28_s15 }
  0x1a   :  { %p304_p11 = scmp.ne.s32.totalorder %s28_s15, %s303_s6  ;;  %p309_p13 = scmp.lt.s32.totalorder %s303_s6, %s303_s6 }
  0x1c   :  { %p310_p0 = por %p309_p13, %p308_p12 }
  0x1e   :  { %p311_p1 = pnand %p310_p0, %p304_p11 }
  0x20   :  { %314 = shalt.err (!%p311_p1)
}
  0x21   :  { %30 = dma.hbm_to_vmem [thread:$0]  %s435_s1, 64, %s28_s15, [#allocation6]  }
  0x22   :  { %337 = dma.done.wait [#allocation3], 512  }
  0x23   :  { %338 = vsyncadd [#allocation3], 4294966784 }
  0x24   :  { %339 = dma.done.wait [#allocation6], 64  }
  0x25   :  { %340 = vsyncadd [#allocation6], 4294967232  ;;  %v391_v0 = vld [vmem:[#allocation2] sm:$0xff]  ;;  %v393_v1 = vld [vmem:[#allocation2 + $0x8] sm:$0xff]  ;;  %s346_s9 = smov [#allocation7]  }
  0x26   :  { %v395_v2 = vld [vmem:[#allocation2 + $0x10] sm:$0xff]  ;;  %v397_v3 = vld [vmem:[#allocation2 + $0x18] sm:$0xff]  ;;  %v43_v4 = vrot.slane %v391_v0, 4  ;;  %v49_v5 = vrot.slane %v393_v1, 4  ;;  %v67_v7 = vmul.f32 %v391_v0, %v391_v0  ;;  %v68_v9 = vmul.f32 %v393_v1, %v393_v1  ;;  %s249_s10 = sshll.u32 %s346_s9, 4  ;;  %s250_s10 = int_to_ptr.vmem [resolvable:$true] %s249_s10 }
  0x27   :  { %v55_v6 = vrot.slane %v395_v2, 4  ;;  %v61_v8 = vrot.slane %v397_v3, 4  ;;  %v69_v10 = vmul.f32 %v395_v2, %v395_v2  ;;  %v70_v11 = vmul.f32 %v397_v3, %v397_v3  ;;  %p320_p3 = scmp.lt.s32.totalorder %s250_s10, %s250_s10 }
  0x28   :  { %v44_v12 = vadd.f32 %v43_v4, %v391_v0  ;;  %v50_v13 = vadd.f32 %v49_v5, %v393_v1  ;;  %v71_v15 = vrot.slane %v67_v7, 4  ;;  %v77_v17 = vrot.slane %v68_v9, 4 }
  0x29   :  { %v56_v14 = vadd.f32 %v55_v6, %v395_v2  ;;  %v62_v16 = vadd.f32 %v61_v8, %v397_v3  ;;  %v83_v18 = vrot.slane %v69_v10, 4  ;;  %v89_v19 = vrot.slane %v70_v11, 4 }
  0x2a   :  { %v45_v20 = vrot.slane %v44_v12, 2  ;;  %v51_v21 = vrot.slane %v50_v13, 2  ;;  %v72_v23 = vadd.f32 %v71_v15, %v67_v7  ;;  %v78_v25 = vadd.f32 %v77_v17, %v68_v9 }
  0x2b   :  { %v57_v22 = vrot.slane %v56_v14, 2  ;;  %v63_v24 = vrot.slane %v62_v16, 2  ;;  %v84_v26 = vadd.f32 %v83_v18, %v69_v10  ;;  %v90_v27 = vadd.f32 %v89_v19, %v70_v11 }
  0x2c   :  { %v46_v28 = vadd.f32 %v45_v20, %v44_v12  ;;  %v52_v29 = vadd.f32 %v51_v21, %v50_v13  ;;  %v73_v31 = vrot.slane %v72_v23, 2  ;;  %v79_v33 = vrot.slane %v78_v25, 2 }
  0x2d   :  { %v58_v30 = vadd.f32 %v57_v22, %v56_v14  ;;  %v64_v32 = vadd.f32 %v63_v24, %v62_v16  ;;  %v85_v34 = vrot.slane %v84_v26, 2  ;;  %v91_v35 = vrot.slane %v90_v27, 2 }
  0x2e   :  { %v47_v36 = vrot.slane %v46_v28, 1  ;;  %v53_v37 = vrot.slane %v52_v29, 1  ;;  %v74_v39 = vadd.f32 %v73_v31, %v72_v23  ;;  %v80_v41 = vadd.f32 %v79_v33, %v78_v25 }
  0x2f   :  { %v59_v38 = vrot.slane %v58_v30, 1  ;;  %v65_v40 = vrot.slane %v64_v32, 1  ;;  %v86_v42 = vadd.f32 %v85_v34, %v84_v26  ;;  %v92_v43 = vadd.f32 %v91_v35, %v90_v27  ;;  %v123_v35 = vld [vmem:[#allocation5] sm:$0xf] }
  0x30   :  { %v48_v44 = vadd.f32 %v47_v36, %v46_v28  ;;  %v54_v45 = vadd.f32 %v53_v37, %v52_v29  ;;  %v75_v47 = vrot.slane %v74_v39, 1  ;;  %v81_v49 = vrot.slane %v80_v41, 1 }
  0x31   :  { %v60_v46 = vadd.f32 %v59_v38, %v58_v30  ;;  %v66_v48 = vadd.f32 %v65_v40, %v64_v32  ;;  %v87_v50 = vrot.slane %v86_v42, 1  ;;  %v93_v51 = vrot.slane %v92_v43, 1 }
  0x32   :  { %v76_v52 = vadd.f32 %v75_v47, %v74_v39  ;;  %v95_v53 = vmul.f32 0.125, %v48_v44  ;;  %v96_v54 = vmul.f32 0.125, %v54_v45  ;;  %v82_v56 = vadd.f32 %v81_v49, %v80_v41 }
  0x33   :  { %v97_v55 = vmul.f32 0.125, %v60_v46  ;;  %v88_v57 = vadd.f32 %v87_v50, %v86_v42  ;;  %v94_v58 = vadd.f32 %v93_v51, %v92_v43  ;;  %v98_v59 = vmul.f32 0.125, %v66_v48 }
  0x34   :  { %v99_v60 = vmul.f32 0.125, %v76_v52  ;;  %v103_v61 = vmul.f32 %v95_v53, %v95_v53  ;;  %v104_v62 = vmul.f32 %v96_v54, %v96_v54  ;;  %v100_v4 = vmul.f32 0.125, %v82_v56 }
  0x35   :  { %v105_v63 = vmul.f32 %v97_v55, %v97_v55  ;;  %v101_v5 = vmul.f32 0.125, %v88_v57  ;;  %v102_v6 = vmul.f32 0.125, %v94_v58  ;;  %v106_v7 = vmul.f32 %v98_v59, %v98_v59  ;;  %v124_v58 = vld [vmem:[%s436_s2] sm:$0xf]  ;;  %s315_s2 = scalar_lea.vmem %s250_s10, 512 }
  0x36   :  { %v107_v8 = vsub.f32 %v99_v60, %v103_v61  ;;  %v108_v9 = vsub.f32 %v100_v4, %v104_v62  ;;  %v345_v20 = vmov 1966171168   ;;  %v134_v22 = vlaneseq  ;;  %p316_p2 = scmp.ne.s32.totalorder %s250_s10, %s315_s2  ;;  %p321_p4 = scmp.lt.s32.totalorder %s315_s2, %s315_s2 }
  0x37   :  { %v109_v10 = vsub.f32 %v101_v5, %v105_v63  ;;  %v110_v11 = vsub.f32 %v102_v6, %v106_v7  ;;  %v132_v21 = vunpack.c.l.s4 %v345_v20 }
  0x38   :  { %v111_v12 = vmax.f32 %v107_v8, 0.0  ;;  %v112_v13 = vmax.f32 %v108_v9, 0.0  ;;  %v135_v24 = vshrl.u32 %v134_v22, 7  ;;  %p322_p5 = por %p321_p4, %p320_p3 }
  0x39   :  { %v113_v14 = vmax.f32 %v109_v10, 0.0  ;;  %v114_v15 = vmax.f32 %v110_v11, 0.0  ;;  %v133_v23 = vunpack.c.0.s8 %v132_v21 }
  0x3a   :  { %v115_v16 = vadd.f32 1e-05, %v111_v12  ;;  %v116_v17 = vadd.f32 1e-05, %v112_v13  ;;  %v158_v36 = vsub.s32 0, %v135_v24  ;;  %v162_v38 = vsub.s32 1, %v135_v24  ;;  %p323_p6 = pnand %p322_p5, %p316_p2 }
  0x3b   :  { %v117_v18 = vadd.f32 1e-05, %v113_v14  ;;  %v118_v19 = vadd.f32 1e-05, %v114_v15  ;;  %v136_v26 = vsub.s32 %v133_v23, %v135_v24  ;;  %v166_v39 = vsub.s32 2, %v135_v24 }
  0x3c   :  { %263 = vrsqrt.f32 %v115_v16  ;;  %v170_v40 = vsub.s32 3, %v135_v24 }
  0x3d   :  { %265 = vrsqrt.f32 %v116_v17 }
  0x3e   :  { %267 = vrsqrt.f32 %v117_v18 }
  0x3f   :  { %269 = vrsqrt.f32 %v118_v19 }
  0x46   :  { %v264_v25 = vpop.eup %263 }
  0x47   :  { %v266_v27 = vpop.eup %265 }
  0x48   :  { %v268_v28 = vpop.eup %267  ;;  %v129_v29 = vcombine.low %v264_v25, %v266_v27 }
  0x49   :  { %v270_v30 = vpop.eup %269 }
  0x4a   :  { %v130_v31 = vcombine.low %v268_v28, %v270_v30  ;;  %v137_v32 = vrot.slane %v129_v29, %v136_v26 }
  0x4c   :  { %v144_v33 = vrot.slane %v130_v31, %v136_v26 }
  0x4e   :  { %v145_v34 = vcombine.low %v137_v32, %v144_v33 }
  0x50   :  { %v152_v37 = vrot.slane %v145_v34, %v136_v26 }
  0x52   :  { %v154_v41 = vmul.f32 %v152_v37, %v123_v35 }
  0x54   :  { %v159_v42 = vrot.slane %v154_v41, %v158_v36  ;;  %v163_v43 = vrot.slane %v154_v41, %v162_v38  ;;  %v167_v44 = vrot.slane %v154_v41, %v166_v39  ;;  %v171_v45 = vrot.slane %v154_v41, %v170_v40 }
  0x56   :  { %v176_v46 = vmul.f32 %v159_v42, %v95_v53  ;;  %v177_v47 = vmul.f32 %v163_v43, %v96_v54  ;;  %v178_v48 = vmul.f32 %v167_v44, %v97_v55  ;;  %v179_v49 = vmul.f32 %v171_v45, %v98_v59 }
  0x57   :  { %v210_v61 = vmul.f32 %v159_v42, %v391_v0  ;;  %v211_v63 = vmul.f32 %v163_v43, %v393_v1  ;;  %v212_v53 = vmul.f32 %v167_v44, %v395_v2  ;;  %v213_v54 = vmul.f32 %v171_v45, %v397_v3 }
  0x58   :  { %v184_v50 = vcombine.low %v176_v46, %v177_v47  ;;  %v185_v51 = vcombine.low %v178_v48, %v179_v49 }
  0x5a   :  { %v192_v52 = vrot.slane %v184_v50, %v136_v26  ;;  %v199_v56 = vrot.slane %v185_v51, %v136_v26 }
  0x5c   :  { %v200_v57 = vcombine.low %v192_v52, %v199_v56 }
  0x5e   :  { %v207_v60 = vrot.slane %v200_v57, %v136_v26 }
  0x60   :  { %v209_v62 = vsub.f32 %v124_v58, %v207_v60 }
  0x62   :  { %v218_v55 = vrot.slane %v209_v62, %v158_v36  ;;  %v222_v59 = vrot.slane %v209_v62, %v162_v38  ;;  %v226_v4 = vrot.slane %v209_v62, %v166_v39  ;;  %v230_v5 = vrot.slane %v209_v62, %v170_v40 }
  0x64   :  { %v235_v6 = vadd.f32 %v218_v55, %v210_v61  ;;  %v236_v7 = vadd.f32 %v222_v59, %v211_v63  ;;  %v237_v8 = vadd.f32 %v226_v4, %v212_v53  ;;  %v238_v9 = vadd.f32 %v230_v5, %v213_v54 }
  0x66   :  { %239 = vst [vmem:[#allocation7] sm:$0xff] %v235_v6  ;;  %240 = vst [vmem:[#allocation7 + $0x8] sm:$0xff] %v236_v7 }
  0x67   :  { %241 = vst [vmem:[#allocation7 + $0x10] sm:$0xff] %v237_v8  ;;  %242 = vst [vmem:[#allocation7 + $0x18] sm:$0xff] %v238_v9 }
  0x68   :  { %326 = shalt.err (!%p323_p6)
}
  0x69   :  { %s327_s13 = scalar_lea.hbm %s437_s3, 512 }
  0x6a   :  { %p328_p7 = scmp.ne.s32.totalorder %s437_s3, %s327_s13  ;;  %p331_p8 = scmp.lt.u32.totalorder %s327_s13, %s437_s3 }
  0x6c   :  { %p333_p9 = pnand %p331_p8, %p328_p7 }
  0x6e   :  { %336 = shalt.err (!%p333_p9)
}
  0x6f   :  { %252 = dma.vmem_to_hbm [thread:$0]  %s250_s10, 512, %s437_s3, [#allocation4]  }
  0x70   :  { %341 = dma.done.wait [#allocation4], 512  }
  0x71   :  { %342 = vsyncadd [#allocation4], 4294966784 }
  0x72   :  { %256 = vsyncpa [#allocation3], 1 }
  0x73   :  { %257 = vsyncpa [#allocation6], 1 }
  0x74   :  { %258 = vsyncpa [#allocation4], 1 }

</bundles_post_ra>
